<compile_context>
chip_gen: v7x
topology: tpu7x:2x2x1
jax: 0.10.0
libtpu: 0.0.40
codegen_flags: <defaults>
</compile_context>

<pallas_src>
import jax
import jax.numpy as jnp
from jax.experimental import pallas as pl
from jax.experimental.pallas import tpu as pltpu


def _normalize_kernel(mean_ref, inv_std_ref, x_ref, o_ref):
    # mean_ref / inv_std_ref: (C,) f32 scalar-prefetch refs in SMEM.
    # x_ref / o_ref:          (bn, 1, bh, W) VMEM tiles of one channel.
    c = pl.program_id(0)
    m = mean_ref[c]
    s = inv_std_ref[c]
    x = x_ref[...].astype(jnp.float32)
    o_ref[...] = ((x - m) * s).astype(o_ref.dtype)


def _pick_blocks(N, H, W, itemsize, target_bytes):
    """Pick (bn, bh) for a (bn, 1, bh, W) block of an NCHW tensor.

    Last two block dims are (bh, W): W is always the full dim; bh is either
    the full H or a multiple of 8 (the (8, 128) block rule).
    """
    row_bytes = W * itemsize
    plane_bytes = H * row_bytes
    if plane_bytes > target_bytes and H >= 8:
        # One (n, c) plane already exceeds the target: split H.
        bn = 1
        bh = max(8, ((target_bytes // max(row_bytes, 1)) // 8) * 8)
        bh = min(bh, H)
    else:
        # Whole spatial plane per block; grow across the batch dim
        # (same channel => one scalar mean/std pair still applies).
        bh = H
        bn = int(min(N, max(1, target_bytes // max(plane_bytes, 1))))
    return bn, bh


def normalize(x, mean, std, *, target_block_bytes=2 * 1024 * 1024):
    """x: (N, C, H, W); mean, std: (C,). Returns (x - mean) / std per channel."""
    N, C, H, W = x.shape
    itemsize = jnp.dtype(x.dtype).itemsize

    # Per-channel stats in f32, kept tiny and placed in SMEM via scalar prefetch.
    mean_f32 = mean.astype(jnp.float32).reshape(C)
    inv_std_f32 = (1.0 / std.astype(jnp.float32)).reshape(C)

    bn, bh = _pick_blocks(N, H, W, itemsize, target_block_bytes)
    grid = (C, pl.cdiv(N, bn), pl.cdiv(H, bh))

    # VMEM budget: in + out, double-buffered, with (8, 128) padding of the
    # trailing two block dims. Keep headroom; do not exceed v7x's 64 MiB.
    padded_rows = ((bh + 7) // 8) * 8
    padded_lanes = ((W + 127) // 128) * 128
    padded_block_bytes = bn * padded_rows * padded_lanes * itemsize
    vmem_limit = int(min(max(4 * padded_block_bytes + (1 << 20), 32 << 20), 48 << 20))

    nbytes = x.size * itemsize
    cost = pl.CostEstimate(
        flops=2 * x.size,
        transcendentals=0,
        bytes_accessed=2 * nbytes + mean_f32.nbytes + inv_std_f32.nbytes,
    )

    block = (bn, 1, bh, W)

    def idx_map(c, nb, hb, mean_ref, inv_std_ref):
        del mean_ref, inv_std_ref  # prefetch refs unused by the index map
        return (nb, c, hb, 0)

    out = pl.pallas_call(
        _normalize_kernel,
        out_shape=jax.ShapeDtypeStruct((N, C, H, W), x.dtype),
        grid_spec=pltpu.PrefetchScalarGridSpec(
            num_scalar_prefetch=2,
            grid=grid,
            in_specs=[pl.BlockSpec(block, idx_map)],
            out_specs=pl.BlockSpec(block, idx_map),
        ),
        compiler_params=pltpu.CompilerParams(
            dimension_semantics=("parallel", "parallel", "parallel"),
            vmem_limit_bytes=vmem_limit,
        ),
        cost_estimate=cost,
        # If the caller can donate x, add input_output_aliases={2: 0}
        # (operand 2 = x, after the two scalar-prefetch operands) to avoid a
        # second full-size HBM buffer.
    )(mean_f32, inv_std_f32, x)

    return out


if __name__ == "__main__":
    key = jax.random.PRNGKey(0)
    N, C, H, W = 2, 4, 16, 16

    # Deterministic "parameters" (the module's __init__ takes mean/std lists).
    mean = jnp.array([0.485, 0.456, 0.406, 0.5], dtype=jnp.float32)
    std = jnp.array([0.229, 0.224, 0.225, 0.25], dtype=jnp.float32)

    x = jax.random.normal(key, (N, C, H, W), dtype=jnp.float32)

    out = normalize(x, mean, std)
    jax.block_until_ready(out)

    # Reference check (plain JAX, mirrors the PyTorch broadcasting).
    ref = (x - mean[None, :, None, None]) / std[None, :, None, None]
    assert out.shape == ref.shape and out.dtype == ref.dtype
    err = float(jnp.max(jnp.abs(out - ref)))
    # Kernel uses (x - mean) * (1/std); differs from divide by <= ~2 ulp.
    assert jnp.allclose(out, ref, atol=1e-5, rtol=1e-5), err

    print("KERNEL_OK")
</pallas_src>

<mosaic_0001>
module attributes {stable_mosaic.version = 11 : i64} {
  func.func @_normalize_kernel(%arg0: i32, %arg1: i32, %arg2: i32, %arg3: memref<4xf32, #tpu.memory_space<smem>>, %arg4: memref<4xf32, #tpu.memory_space<smem>>, %arg5: memref<2x1x16x16xf32, #tpu.memory_space<vmem>>, %arg6: memref<2x1x16x16xf32, #tpu.memory_space<vmem>>) attributes {dimension_semantics = [#tpu.dimension_semantics<parallel>, #tpu.dimension_semantics<parallel>, #tpu.dimension_semantics<parallel>], iteration_bounds = array<i64: 4, 1, 1>, scalar_prefetch = 2 : i64, scratch_operands = 0 : i64, tpu.core_type = #tpu.core_type<tc>, window_params = [{transform_indices = @transform_0, window_bounds = array<i64: 2, 1, 16, 16>}, {transform_indices = @transform_1, window_bounds = array<i64: 2, 1, 16, 16>}]} {
    %0 = arith.index_cast %arg0 : i32 to index
    %1 = memref.load %arg3[%0] : memref<4xf32, #tpu.memory_space<smem>>
    %2 = arith.index_cast %arg0 : i32 to index
    %3 = memref.load %arg4[%2] : memref<4xf32, #tpu.memory_space<smem>>
    %c0 = arith.constant 0 : index
    %c0_0 = arith.constant 0 : index
    %c0_1 = arith.constant 0 : index
    %c0_2 = arith.constant 0 : index
    %4 = vector.load %arg5[%c0, %c0_0, %c0_1, %c0_2] : memref<2x1x16x16xf32, #tpu.memory_space<vmem>>, vector<2x1x16x16xf32>
    %5 = vector.broadcast %1 : f32 to vector<2x1x16x16xf32>
    %6 = arith.subf %4, %5 : vector<2x1x16x16xf32>
    %7 = vector.broadcast %3 : f32 to vector<2x1x16x16xf32>
    %8 = arith.mulf %6, %7 : vector<2x1x16x16xf32>
    %c0_3 = arith.constant 0 : index
    %c0_4 = arith.constant 0 : index
    %c0_5 = arith.constant 0 : index
    %c0_6 = arith.constant 0 : index
    %9 = vector.load %arg6[%c0_3, %c0_4, %c0_5, %c0_6] : memref<2x1x16x16xf32, #tpu.memory_space<vmem>>, vector<2x1x16x16xf32>
    tpu.vector_store %arg6[%c0_3, %c0_4, %c0_5, %c0_6], %8 {strides = array<i32>} : memref<2x1x16x16xf32, #tpu.memory_space<vmem>>, vector<2x1x16x16xf32>,
    return
  }
  func.func @transform_0(%arg0: i32, %arg1: i32, %arg2: i32, %arg3: memref<4xf32, #tpu.memory_space<smem>>, %arg4: memref<4xf32, #tpu.memory_space<smem>>) -> (i32, i32, i32, i32) {
    %c0_i32 = arith.constant 0 : i32
    %c0_i32_0 = arith.constant 0 : i32
    return %arg1, %arg0, %arg2, %c0_i32 : i32, i32, i32, i32
  }
  func.func @transform_1(%arg0: i32, %arg1: i32, %arg2: i32, %arg3: memref<4xf32, #tpu.memory_space<smem>>, %arg4: memref<4xf32, #tpu.memory_space<smem>>) -> (i32, i32, i32, i32) {
    %c0_i32 = arith.constant 0 : i32
    %c0_i32_0 = arith.constant 0 : i32
    return %arg1, %arg0, %arg2, %c0_i32 : i32, i32, i32, i32
  }
}

</mosaic_0001>

<bundles_post_ra>
// kernel: tpu_custom_call.1
= control target key start
LH: loop header
LB: loop body
LE: loop exit
PB: predicated region body
PF: predicated region fallthrough
CT: control target
= control target key end

     0   :  { %s741_s0 = inlined_call_operand.hbm [shape: f32[4], index: 0, kind: input, shape index: {}]   ;;  %s742_s2 = inlined_call_operand.hbm [shape: f32[2,4,16,16], index: 2, kind: input, shape index: {}]   ;;  %s743_s3 = inlined_call_operand.hbm [shape: f32[2,4,16,16], index: 3, kind: output, shape index: {}]   ;;  %s744_s1 = inlined_call_operand.vmem [shape: f32[4], index: 1, kind: input, shape index: {}]  }
   0x1   :  { %s473_s14 = scalar_lea.hbm %s741_s0, 16 }
   0x2   :  { %p474_p0 = scmp.ne.s32.totalorder %s741_s0, %s473_s14  ;;  %p477_p1 = scmp.lt.u32.totalorder %s473_s14, %s741_s0 }
   0x4   :  { %p479_p2 = pnand %p477_p1, %p474_p0 }
   0x6   :  { %482 = shalt.err (!%p479_p2)  }
   0x7   :  { %s553_s19 = smov [#allocation3]   ;;  %s10_s24 = sshll.u32 %s744_s1, 4  ;;  %s11_s24 = int_to_ptr.vmem [resolvable:$true] %s10_s24 }
   0x8   :  { %9 = dma.hbm_to_smem %s741_s0, 16, %s553_s19, [#allocation2] }
   0x9   :  { %s483_s25 = scalar_lea.vmem %s11_s24, 16  ;;  %p488_p4 = scmp.lt.s32.totalorder %s11_s24, %s11_s24 }
   0xa   :  { %p484_p3 = scmp.ne.s32.totalorder %s11_s24, %s483_s25  ;;  %p489_p5 = scmp.lt.s32.totalorder %s483_s25, %s483_s25 }
   0xc   :  { %p490_p6 = por %p489_p5, %p488_p4 }
   0xe   :  { %p491_p7 = pnand %p490_p6, %p484_p3 }
  0x10   :  { %494 = shalt.err (!%p491_p7)  }
  0x11   :  { %s554_s26 = smov [#allocation4]  }
  0x12   :  { %13 = dma.vmem_to_smem %s11_s24, 16, %s554_s26, [#allocation2] }
  0x13   :  { %519 = dma.done.wait [#allocation2], 32 }
  0x14   :  { %520 = vsyncadd [#allocation2], 4294967264 }
  0x15   :  { %15 = sfence }
  0x16   :  { %16 = vsyncpa [#allocation6], 0 }
  0x17   :  { %18 = vsyncpa [#allocation6 + $0x1], 0 }
  0x18   :  { %19 = vsyncpa [#allocation7], 0 }
  0x19   :  { %21 = vsyncpa [#allocation7 + $0x1], 0  ;;  %s603_s0 = smov 0   ;;  %s605_s1 = smov 0  }
  0x1a   :  { %s607_s27 = smov 0   ;;  %s609_s28 = smov 0  }
  0x1b   :  { %s611_s29 = smov 0   ;;  %s613_s30 = smov 0  }
  0x1c LB: > { %s369_s4 = sadd.s32 4294967295, %s551_s30   ;;  %s370_s5 = sadd.s32 4294967294, %s551_s30   ;;  %s551_s30 = sphi %s613_s30, %s27_s30   ;;  %s547_s29 = sphi %s611_s29, %s753_s29   ;;  %s543_s28 = sphi %s609_s28, %s752_s28   ;;  %s539_s27 = sphi %s607_s27, %s751_s27   ;;  %s535_s1 = sphi %s605_s1, %s750_s1   ;;  %s531_s0 = sphi %s603_s0, %s749_s0  }
  0x1d   : > { %s46_s6 = sadd.s32 1, %s547_s29  ;;  %s57_s7 = sadd.s32 1, %s539_s27 }
  0x1e   : > { %p48_p8 = scmp.ge.s32.totalorder %s46_s6, 4  ;;  %p64_p9 = scmp.ne.s32.totalorder %s539_s27, %s535_s1 }
  0x1f   : > { %p65_p10 = scmp.eq.s32.totalorder %s551_s30, 0  ;;  %p70_p11 = scmp.ne.s32.totalorder %s535_s1, %s531_s0 }
  0x20   : > { %s755_s6 = smov (%p48_p8, %s46_s6), 0  ;;  %p71_p13 = scmp.eq.s32.totalorder %s369_s4, 0 }
  0x21   : > { %p644_p12 = por %p65_p10, %p64_p9  ;;  %s51_s9 = ssub.s32 %s547_s29, %s755_s6 }
  0x22   : > { %p98_p0 = scmp.eq.s32.totalorder %s369_s4, 3  ;;  %p55_p1 = scmp.eq.s32.totalorder %s51_s9, 0 }
  0x23   : > { %p650_p2 = por %p71_p13, %p70_p11  ;;  %p104_p4 = scmp.eq.s32.totalorder %s370_s5, 3 }
  0x24   : > { %p654_p3 = por %p98_p0, %p64_p9  ;;  %p372_p6 = scmp.ge.s32.totalorder %s551_s30, 4 }
  0x25   : > { %s659_s12 = scalar_select %p55_p1, %s539_s27, %s57_s7  }
  0x26   : > { %p661_p5 = por %p104_p4, %p70_p11  ;;  %120 = sbr.rel (%p372_p6) target bundleno = 58 (0x3a), region = 16 }
  0x2d   : > { %s124_s14 = sand.u32 1, %s539_s27   ;;  %s386_s15 = sshll.u32 %s547_s29, 8 }
  0x2e   : > { %s373_s16 = sshll.u32 %s124_s14, 5  ;;  %s139_s19 = scalar_lea.hbm %s742_s2, %s386_s15 }
  0x2f   : > { %s388_s20 = scalar_select %p644_p12, [#allocation0], [#allocation13] }
  0x30   : > { %s128_s21 = scalar_lea.vmem [#allocation5], %s373_s16  ;;  %s555_s24 = smov 1024  }
  0x31   : > { %s152_s22 = sshll.u32 %s128_s21, 4  ;;  %s144_s23 = sld [smem:[%s388_s20]]   ;;  %s153_s22 = int_to_ptr.vmem [resolvable:$true] %s152_s22 }
  0x32   : > { %389 = sst [smem:[#allocation10]] (%p644_p12), %s555_s24  ;;  %s556_s25 = smov 256  }
  0x33   : > { %390 = sst [smem:[#allocation10 + $0x1]] (%p644_p12), %s556_s25  ;;  %s557_s26 = smov 2  }
  0x34   : > { %391 = sst [smem:[#allocation10 + $0x2]] (%p644_p12), %s557_s26  ;;  %s558_s4 = smov 128  }
  0x35   : > { %392 = sst [smem:[#allocation10 + $0x3]] (%p644_p12), %s558_s4  ;;  %s559_s7 = smov 8  }
  0x36   : > { %393 = sst [smem:[#allocation10 + $0x4]] (%p644_p12), %s558_s4  ;;  %s125_s15 = scalar_lea.sflag [#allocation6], %s124_s14 }
  0x37   : > { %s376_s5 = sshll.u32 %s144_s23, 26  ;;  %394 = sst [smem:[#allocation10 + $0x5]] (%p644_p12), %s559_s7 }
  0x38   : > { %s377_s9 = sadd.s32 134217728, %s376_s5  ;;  %s560_s16 = smov [#allocation9]  }
  0x39   : > { %395 = dma.general (%p644_p12), %s139_s19, 512, %s153_s22, %s125_s15, %s560_s16, [#allocation10], %s377_s9, 0  }
  0x3a PF: > { %p378_p7 = scmp.ge.s32.totalorder %s551_s30, 1  ;;  %p173_p8 = scmp.lt.s32.totalorder %s551_s30, 5 }
  0x3c   : > { %p174_p9 = pnand %p378_p7, %p173_p8 }
  0x3d   : > { %s690_s17 = sand.u32 (!%p174_p9), 1, %s535_s1  }
  0x3e   : > { %177 = sbr.rel (%p174_p9) target bundleno = 92 (0x5c), region = 24  ;;  %s379_s18 = sshll.u32 (!%p174_p9), %s690_s17, 5 }
  0x3f   : > { %s180_s20 = scalar_lea.sflag (!%p174_p9), [#allocation6], %s690_s17  ;;  %s183_s21 = scalar_lea.vmem (!%p174_p9), [#allocation5], %s379_s18 }
  0x45   : > { %522 = dma.done.wait (%p650_p2), %s180_s20, 512  }
  0x46   : > { %524 = vsyncadd (%p650_p2), %s180_s20, 4294966784  ;;  %s206_s8 = sld [smem:[#allocation3 + %s543_s28]]  ;;  %v208_v0 = vld [vmem:[%s183_s21] sm:$0xff]  ;;  %v209_v3 = vld [vmem:[%s183_s21 + $0x8] sm:$0xff]  ;;  %vm222_vm0 = vcmask 130048   ;;  %s201_s10 = scalar_lea.vmem [#allocation8], %s379_s18 }
  0x47   : > { %s207_s14 = sld [smem:[#allocation4 + %s543_s28]]  ;;  %v210_v6 = vld [vmem:[%s183_s21 + $0x10] sm:$0xff]  ;;  %v211_v7 = vld [vmem:[%s183_s21 + $0x18] sm:$0xff]  ;;  %s228_s19 = scalar_lea.sflag [#allocation7], %s690_s17 }
  0x4c   : > { %v212_v1 = vstv %s206_s8 }
  0x4d   : > { %v217_v2 = vstv %s207_s14  ;;  %v213_v4 = vsub.f32 %v208_v0, %v212_v1  ;;  %v214_v5 = vsub.f32 %v209_v3, %v212_v1  ;;  %v215_v8 = vsub.f32 %v210_v6, %v212_v1 }
  0x4e   : > { %v216_v9 = vsub.f32 %v211_v7, %v212_v1 }
  0x4f   : > { %v218_v10 = vmul.f32 %v217_v2, %v213_v4  ;;  %v219_v11 = vmul.f32 %v217_v2, %v214_v5  ;;  %v220_v12 = vmul.f32 %v217_v2, %v215_v8 }
  0x50   : > { %v221_v13 = vmul.f32 %v217_v2, %v216_v9 }
  0x51   : > { %223 = vst.msk [vmem:[%s201_s10] sm:$0xff] %vm222_vm0, %v218_v10  ;;  %224 = vst.msk [vmem:[%s201_s10 + $0x8] sm:$0xff] %vm222_vm0, %v219_v11 }
  0x52   : > { %225 = vst.msk [vmem:[%s201_s10 + $0x10] sm:$0xff] %vm222_vm0, %v220_v12  ;;  %226 = vst.msk [vmem:[%s201_s10 + $0x18] sm:$0xff] %vm222_vm0, %v221_v13 }
  0x53   : > { %s387_s22 = sshll.u32 %s543_s28, 8  ;;  %s262_s23 = sshll.u32 %s201_s10, 4  ;;  %s263_s23 = int_to_ptr.vmem [resolvable:$true] %s262_s23 }
  0x54   : > { %s245_s26 = scalar_lea.hbm %s743_s3, %s387_s22  ;;  %s561_s4 = smov 256  }
  0x55   : > { %397 = sst [smem:[#allocation12]] (%p654_p3), %s561_s4  ;;  %s562_s5 = smov 1024  }
  0x56   : > { %398 = sst [smem:[#allocation12 + $0x1]] (%p654_p3), %s562_s5  ;;  %s563_s7 = smov 2  }
  0x57   : > { %399 = sst [smem:[#allocation12 + $0x2]] (%p654_p3), %s563_s7  ;;  %s564_s9 = smov 128  }
  0x58   : > { %400 = sst [smem:[#allocation12 + $0x3]] (%p654_p3), %s564_s9  ;;  %s565_s28 = smov 8  }
  0x59   : > { %401 = sst [smem:[#allocation12 + $0x4]] (%p654_p3), %s564_s9  ;;  %s566_s15 = smov [#allocation11]  }
  0x5a   : > { %402 = sst [smem:[#allocation12 + $0x5]] (%p654_p3), %s565_s28  ;;  %s567_s16 = smov 0  }
  0x5b   : > { %403 = dma.general (%p654_p3), %s263_s23, 512, %s245_s26, %s228_s19, %s566_s15, [#allocation12], %s567_s16, 0  }
  0x5c PF: > { %p409_p10 = scmp.ge.s32.totalorder %s551_s30, 2  ;;  %s290_s17 = sand.u32 1, %s531_s0  }
  0x5d   : > { %s291_s18 = scalar_lea.sflag [#allocation7], %s290_s17 }
  0x5e   : > { %p406_p11 = pnand %p409_p10, %p661_p5 }
  0x60   : > { %526 = dma.done.wait (!%p406_p11), %s291_s18, 512  }
  0x61   : > { %528 = vsyncadd (!%p406_p11), %s291_s18, 4294966784  ;;  %s27_s30 = sadd.s32 1, %s551_s30   ;;  %s749_s0 = smov %s535_s1 }
  0x62   : > { %p24_p12 = scmp.ge.s32.totalorder %s27_s30, 6   ;;  %s750_s1 = smov %s539_s27 }
  0x63   : > { %s751_s27 = smov %s659_s12  ;;  %s752_s28 = smov %s547_s29 }
  0x64   : > { %s753_s29 = smov %s755_s6  ;;  %26 = sbr.rel (!%p24_p12) target bundleno = 28 (0x1c), region = 79 }
  0x6b   :  { %296 = vsyncpa [#allocation6], 1 }
  0x6c   :  { %298 = vsyncpa [#allocation6 + $0x1], 1 }
  0x6d   :  { %299 = vsyncpa [#allocation7], 1 }
  0x6e   :  { %301 = vsyncpa [#allocation7 + $0x1], 1 }

</bundles_post_ra>
